<compile_context>
chip_gen: v7x
topology: tpu7x:2x2x1
jax: 0.10.0
libtpu: 0.0.40
codegen_flags: <defaults>
</compile_context>

<pallas_src>
import numpy as np
import jax
import jax.numpy as jnp
from jax import lax
from jax.experimental import pallas as pl
from jax.experimental.pallas import tpu as pltpu


# ----------------------------- Pallas kernel --------------------------------

def bigru_final_hidden_kernel(max_len_ref, len_ref,
                              gi_f_ref, gi_b_ref,
                              whh_f_ref, whh_b_ref,
                              bhh_f_ref, bhh_b_ref,
                              out_ref):
    """Fused bidirectional GRU recurrence -> final hidden (fwd + bwd).

    max_len_ref : SMEM (1,)                 int32  max(lengths)
    len_ref     : VMEM (B_pad, H_pad)       int32  lengths, lane-broadcast
    gi_f_ref    : VMEM (T, B_pad, 3*H_pad)  f32    fwd input-gate preacts [r|z|n]
    gi_b_ref    : VMEM (T, B_pad, 3*H_pad)  f32    bwd input-gate preacts [r|z|n]
    whh_*_ref   : VMEM (H_pad, 3*H_pad)     f32    recurrent weights (zero padded)
    bhh_*_ref   : VMEM (B_pad, 3*H_pad)     f32    recurrent biases (pre-broadcast)
    out_ref     : VMEM (B_pad, H_pad)       f32    h_fwd_final + h_bwd_final
    """
    B_pad, H_pad = out_ref.shape

    max_len = max_len_ref[0]
    lengths = len_ref[...]                     # (B_pad, H_pad) int32
    bhh_f = bhh_f_ref[...]                     # (B_pad, 3*H_pad)
    bhh_b = bhh_b_ref[...]

    def gru_gates(gi, gh, h_prev):
        # gi, gh: (B_pad, 3*H_pad) gate pre-activations [r|z|n]; lane slices are
        # aligned at multiples of H_pad (itself a multiple of 128).
        r = jax.nn.sigmoid(gi[:, :H_pad] + gh[:, :H_pad])
        z = jax.nn.sigmoid(gi[:, H_pad:2 * H_pad] + gh[:, H_pad:2 * H_pad])
        n = jnp.tanh(gi[:, 2 * H_pad:] + r * gh[:, 2 * H_pad:])
        return (1.0 - z) * n + z * h_prev

    def step(i, carry):
        h_f, h_b = carry                       # (B_pad, H_pad) each
        tb = max_len - 1 - i                   # backward time index

        gi_f = gi_f_ref[i]                     # leading-axis dynamic index
        gi_b = gi_b_ref[tb]

        # Two independent recurrent dots; whh reloaded from VMEM per step (cheap,
        # hidden under the MXU push) to keep vreg pressure low in the loop body.
        gh_f = jnp.dot(h_f, whh_f_ref[...],
                       preferred_element_type=jnp.float32) + bhh_f
        gh_b = jnp.dot(h_b, whh_b_ref[...],
                       preferred_element_type=jnp.float32) + bhh_b

        hf_new = gru_gates(gi_f, gh_f, h_f)
        hb_new = gru_gates(gi_b, gh_b, h_b)

        # pack_padded_sequence semantics: only update inside each sequence.
        h_f = jnp.where(i < lengths, hf_new, h_f)
        h_b = jnp.where(tb < lengths, hb_new, h_b)
        return (h_f, h_b)

    h0 = jnp.zeros((B_pad, H_pad), jnp.float32)
    # Dynamic trip count == max(lengths): trailing all-padding steps are skipped.
    h_f, h_b = lax.fori_loop(0, max_len, step, (h0, h0))

    # hidden[-2] + hidden[-1]; lane-dense, unmasked store.
    out_ref[...] = h_f + h_b


# ------------------------------ Wrapper --------------------------------------

def _pad_gate_cols(x, H, H_pad):
    """(..., 3H) -> (..., 3*H_pad): each gate's H columns zero-padded to H_pad."""
    lead = x.shape[:-1]
    x3 = x.reshape(lead + (3, H))
    x3 = jnp.pad(x3, [(0, 0)] * len(lead) + [(0, 0), (0, H_pad - H)])
    return x3.reshape(lead + (3 * H_pad,))


def encoder_forward(input_seq, lengths, emb_table, gru_params, hidden_size):
    """input_seq: (T, B) int32 token ids; lengths: (B,) int32; returns squeeze((B, H))."""
    T, B = input_seq.shape
    H = hidden_size
    H_pad = ((H + 127) // 128) * 128       # lane-aligned hidden
    B_pad = ((B + 7) // 8) * 8             # sublane-aligned batch (f32)

    w_ih_f, w_hh_f, b_ih_f, b_hh_f = gru_params["fwd"]
    w_ih_b, w_hh_b, b_ih_b, b_hh_b = gru_params["bwd"]

    # Embedding rows are one-hot selections, so embedding -> input-projection is
    # identical to gathering from a pre-projected (VOCAB, 3H) table.  This removes
    # the (T*B,E)@(E,6H) matmul and the x2d DMA from the kernel entirely (valid
    # because VOCAB*6H is tiny here).
    proj_f = _pad_gate_cols(emb_table @ w_ih_f.T + b_ih_f, H, H_pad)   # (V, 3*H_pad)
    proj_b = _pad_gate_cols(emb_table @ w_ih_b.T + b_ih_b, H, H_pad)

    tok = input_seq.reshape(-1)
    gi_f = jnp.take(proj_f, tok, axis=0).reshape(T, B, 3 * H_pad)
    gi_b = jnp.take(proj_b, tok, axis=0).reshape(T, B, 3 * H_pad)
    gi_f = jnp.pad(gi_f, ((0, 0), (0, B_pad - B), (0, 0)))
    gi_b = jnp.pad(gi_b, ((0, 0), (0, B_pad - B), (0, 0)))

    # Recurrent weights (PyTorch layout (3H, H)) -> (H_pad, 3*H_pad), gate-blocked
    # and zero padded so padded lanes of h never contribute.
    def pad_whh(w_hh):
        w = _pad_gate_cols(w_hh.T, H, H_pad)              # (H, 3*H_pad)
        return jnp.pad(w, ((0, H_pad - H), (0, 0)))       # (H_pad, 3*H_pad)

    whh_f_p = pad_whh(w_hh_f)
    whh_b_p = pad_whh(w_hh_b)

    # Recurrent biases pre-broadcast to (B_pad, 3*H_pad): the in-loop add is
    # vreg-aligned with no per-iteration broadcast.
    bhh_f_p = jnp.broadcast_to(_pad_gate_cols(b_hh_f.reshape(1, 3 * H), H, H_pad),
                               (B_pad, 3 * H_pad))
    bhh_b_p = jnp.broadcast_to(_pad_gate_cols(b_hh_b.reshape(1, 3 * H), H, H_pad),
                               (B_pad, 3 * H_pad))

    lengths_i = lengths.astype(jnp.int32)
    lengths_p = jnp.pad(lengths_i, (0, B_pad - B))        # padded rows: length 0
    len_bcast = jnp.broadcast_to(lengths_p[:, None], (B_pad, H_pad))
    max_len = jnp.max(lengths_i).astype(jnp.int32).reshape(1)

    vmem = pl.BlockSpec(memory_space=pltpu.MemorySpace.VMEM)
    smem = pl.BlockSpec(memory_space=pltpu.MemorySpace.SMEM)

    out = pl.pallas_call(
        bigru_final_hidden_kernel,
        out_shape=jax.ShapeDtypeStruct((B_pad, H_pad), jnp.float32),
        in_specs=[smem, vmem, vmem, vmem, vmem, vmem, vmem, vmem],
        out_specs=vmem,
        compiler_params=pltpu.CompilerParams(vmem_limit_bytes=32 * 1024 * 1024),
    )(max_len, len_bcast, gi_f, gi_b, whh_f_p, whh_b_p, bhh_f_p, bhh_b_p)

    # Slice padding away, then .squeeze() as in the PyTorch module.
    return jnp.squeeze(out[:B, :H])


# -------------------------- Pure-JAX reference --------------------------------

def _gru_cell_ref(x, h, w_ih, w_hh, b_ih, b_hh, H):
    gi = x @ w_ih.T + b_ih
    gh = h @ w_hh.T + b_hh
    i_r, i_z, i_n = gi[:, :H], gi[:, H:2 * H], gi[:, 2 * H:]
    h_r, h_z, h_n = gh[:, :H], gh[:, H:2 * H], gh[:, 2 * H:]
    r = jax.nn.sigmoid(i_r + h_r)
    z = jax.nn.sigmoid(i_z + h_z)
    n = jnp.tanh(i_n + r * h_n)
    return (1.0 - z) * n + z * h


def encoder_ref(input_seq, lengths, emb_table, gru_params, H):
    embeds = jnp.take(emb_table, input_seq, axis=0)
    T, B, _ = embeds.shape
    w_ih_f, w_hh_f, b_ih_f, b_hh_f = gru_params["fwd"]
    w_ih_b, w_hh_b, b_ih_b, b_hh_b = gru_params["bwd"]

    h = jnp.zeros((B, H), jnp.float32)
    for t in range(T):
        hn = _gru_cell_ref(embeds[t], h, w_ih_f, w_hh_f, b_ih_f, b_hh_f, H)
        h = jnp.where((t < lengths)[:, None], hn, h)
    h_fwd = h

    h = jnp.zeros((B, H), jnp.float32)
    for t in range(T - 1, -1, -1):
        hn = _gru_cell_ref(embeds[t], h, w_ih_b, w_hh_b, b_ih_b, b_hh_b, H)
        h = jnp.where((t < lengths)[:, None], hn, h)
    h_bwd = h
    return jnp.squeeze(h_fwd + h_bwd)


# --------------------------------- Main ---------------------------------------

if __name__ == "__main__":
    VOCAB, E, H = 50, 16, 32   # vocabulary_size, word_embedding_size, hidden_size
    T, B = 8, 2                # seq_len, batch

    key = jax.random.PRNGKey(0)
    ks = jax.random.split(key, 12)

    # Embedding table init exactly as in the module: (1 - 2*rand)/10, float32.
    emb_table = ((1.0 - 2.0 * jax.random.uniform(ks[0], (VOCAB, E))) / 10.0).astype(jnp.float32)

    # GRU parameters (PyTorch layout: weight_ih (3H, E), weight_hh (3H, H), biases (3H,)).
    stdv = 1.0 / np.sqrt(H)
    def u(k, shape):
        return jax.random.uniform(k, shape, jnp.float32, minval=-stdv, maxval=stdv)

    gru_params = {
        "fwd": (u(ks[1], (3 * H, E)), u(ks[2], (3 * H, H)),
                u(ks[3], (3 * H,)),   u(ks[4], (3 * H,))),
        "bwd": (u(ks[5], (3 * H, E)), u(ks[6], (3 * H, H)),
                u(ks[7], (3 * H,)),   u(ks[8], (3 * H,))),
    }

    # Inputs: padded token-id sequence (T, B) + per-sequence lengths.
    input_seq = jax.random.randint(ks[9], (T, B), 0, VOCAB, dtype=jnp.int32)
    lengths = jnp.array([6, 8], dtype=jnp.int32)   # variable lengths (unsorted OK)

    out = encoder_forward(input_seq, lengths, emb_table, gru_params, H)
    out = jax.block_until_ready(out)

    ref = jax.block_until_ready(encoder_ref(input_seq, lengths, emb_table, gru_params, H))
    np.testing.assert_allclose(np.asarray(out), np.asarray(ref), rtol=1e-4, atol=1e-5)

    print("KERNEL_OK")
</pallas_src>

<mosaic_0001>
module attributes {stable_mosaic.version = 11 : i64} {
  func.func @bigru_final_hidden_kernel(%arg0: memref<1xi32, #tpu.memory_space<smem>>, %arg1: memref<8x128xi32, #tpu.memory_space<vmem>>, %arg2: memref<8x8x384xf32, #tpu.memory_space<vmem>>, %arg3: memref<8x8x384xf32, #tpu.memory_space<vmem>>, %arg4: memref<128x384xf32, #tpu.memory_space<vmem>>, %arg5: memref<128x384xf32, #tpu.memory_space<vmem>>, %arg6: memref<8x384xf32, #tpu.memory_space<vmem>>, %arg7: memref<8x384xf32, #tpu.memory_space<vmem>>, %arg8: memref<8x128xf32, #tpu.memory_space<vmem>>) attributes {dimension_semantics = [], scalar_prefetch = 0 : i64, scratch_operands = 0 : i64, tpu.core_type = #tpu.core_type<tc>} {
    %c0 = arith.constant 0 : index
    %0 = memref.load %arg0[%c0] : memref<1xi32, #tpu.memory_space<smem>>
    %c0_0 = arith.constant 0 : index
    %c0_1 = arith.constant 0 : index
    %1 = vector.load %arg1[%c0_0, %c0_1] : memref<8x128xi32, #tpu.memory_space<vmem>>, vector<8x128xi32>
    %c0_2 = arith.constant 0 : index
    %c0_3 = arith.constant 0 : index
    %2 = vector.load %arg6[%c0_2, %c0_3] : memref<8x384xf32, #tpu.memory_space<vmem>>, vector<8x384xf32>
    %c0_4 = arith.constant 0 : index
    %c0_5 = arith.constant 0 : index
    %3 = vector.load %arg7[%c0_4, %c0_5] : memref<8x384xf32, #tpu.memory_space<vmem>>, vector<8x384xf32>
    %cst = arith.constant 0.000000e+00 : f32
    %4 = vector.broadcast %cst : f32 to vector<8x128xf32>
    %c0_i32 = arith.constant 0 : i32
    %5 = arith.subi %0, %c0_i32 : i32
    %6 = arith.addi %c0_i32, %5 : i32
    %c1_i32 = arith.constant 1 : i32
    %7:2 = scf.for %arg9 = %c0_i32 to %6 step %c1_i32 iter_args(%arg10 = %4, %arg11 = %4) -> (vector<8x128xf32>, vector<8x128xf32>)  : i32 {
      %c1_i32_8 = arith.constant 1 : i32
      %10 = arith.subi %0, %c1_i32_8 : i32
      %11 = arith.subi %10, %arg9 : i32
      %12 = arith.index_cast %arg9 : i32 to index
      %c0_9 = arith.constant 0 : index
      %c0_10 = arith.constant 0 : index
      %13 = vector.load %arg2[%12, %c0_9, %c0_10] : memref<8x8x384xf32, #tpu.memory_space<vmem>>, vector<1x8x384xf32>
      %14 = vector.shape_cast %13 : vector<1x8x384xf32> to vector<8x384xf32>
      %15 = arith.index_cast %11 : i32 to index
      %c0_11 = arith.constant 0 : index
      %c0_12 = arith.constant 0 : index
      %16 = vector.load %arg3[%15, %c0_11, %c0_12] : memref<8x8x384xf32, #tpu.memory_space<vmem>>, vector<1x8x384xf32>
      %17 = vector.shape_cast %16 : vector<1x8x384xf32> to vector<8x384xf32>
      %c0_13 = arith.constant 0 : index
      %c0_14 = arith.constant 0 : index
      %18 = vector.load %arg4[%c0_13, %c0_14] : memref<128x384xf32, #tpu.memory_space<vmem>>, vector<128x384xf32>
      %cst_15 = arith.constant dense<0.000000e+00> : vector<8x384xf32>
      %19 = tpu.matmul %arg10, %18, %cst_15 {dimension_numbers = #tpu.dot_dimension_numbers<[1], [0], [0], [1], [0, 0, 1, 1], [], []>} : vector<8x128xf32>, vector<128x384xf32>, vector<8x384xf32> -> vector<8x384xf32>
      %20 = arith.addf %19, %2 : vector<8x384xf32>
      %c0_16 = arith.constant 0 : index
      %c0_17 = arith.constant 0 : index
      %21 = vector.load %arg5[%c0_16, %c0_17] : memref<128x384xf32, #tpu.memory_space<vmem>>, vector<128x384xf32>
      %cst_18 = arith.constant dense<0.000000e+00> : vector<8x384xf32>
      %22 = tpu.matmul %arg11, %21, %cst_18 {dimension_numbers = #tpu.dot_dimension_numbers<[1], [0], [0], [1], [0, 0, 1, 1], [], []>} : vector<8x128xf32>, vector<128x384xf32>, vector<8x384xf32> -> vector<8x384xf32>
      %23 = arith.addf %22, %3 : vector<8x384xf32>
      %24 = vector.extract_strided_slice %14 {offsets = [0, 0], sizes = [8, 128], strides = [1, 1]} : vector<8x384xf32> to vector<8x128xf32>
      %25 = vector.extract_strided_slice %20 {offsets = [0, 0], sizes = [8, 128], strides = [1, 1]} : vector<8x384xf32> to vector<8x128xf32>
      %26 = arith.addf %24, %25 : vector<8x128xf32>
      %27 = arith.negf %26 : vector<8x128xf32>
      %28 = math.exp %27 : vector<8x128xf32>
      %cst_19 = arith.constant 1.000000e+00 : f32
      %29 = vector.broadcast %cst_19 : f32 to vector<8x128xf32>
      %30 = arith.addf %29, %28 : vector<8x128xf32>
      %31 = arith.divf %29, %30 : vector<8x128xf32>
      %32 = vector.extract_strided_slice %14 {offsets = [0, 128], sizes = [8, 128], strides = [1, 1]} : vector<8x384xf32> to vector<8x128xf32>
      %33 = vector.extract_strided_slice %20 {offsets = [0, 128], sizes = [8, 128], strides = [1, 1]} : vector<8x384xf32> to vector<8x128xf32>
      %34 = arith.addf %32, %33 : vector<8x128xf32>
      %35 = arith.negf %34 : vector<8x128xf32>
      %36 = math.exp %35 : vector<8x128xf32>
      %cst_20 = arith.constant 1.000000e+00 : f32
      %37 = vector.broadcast %cst_20 : f32 to vector<8x128xf32>
      %38 = arith.addf %37, %36 : vector<8x128xf32>
      %39 = arith.divf %37, %38 : vector<8x128xf32>
      %40 = vector.extract_strided_slice %14 {offsets = [0, 256], sizes = [8, 128], strides = [1, 1]} : vector<8x384xf32> to vector<8x128xf32>
      %41 = vector.extract_strided_slice %20 {offsets = [0, 256], sizes = [8, 128], strides = [1, 1]} : vector<8x384xf32> to vector<8x128xf32>
      %42 = arith.mulf %31, %41 : vector<8x128xf32>
      %43 = arith.addf %40, %42 : vector<8x128xf32>
      %44 = math.tanh %43 : vector<8x128xf32>
      %cst_21 = arith.constant 1.000000e+00 : f32
      %45 = vector.broadcast %cst_21 : f32 to vector<8x128xf32>
      %46 = arith.subf %45, %39 : vector<8x128xf32>
      %47 = arith.mulf %46, %44 : vector<8x128xf32>
      %48 = arith.mulf %39, %arg10 : vector<8x128xf32>
      %49 = arith.addf %47, %48 : vector<8x128xf32>
      %50 = vector.extract_strided_slice %17 {offsets = [0, 0], sizes = [8, 128], strides = [1, 1]} : vector<8x384xf32> to vector<8x128xf32>
      %51 = vector.extract_strided_slice %23 {offsets = [0, 0], sizes = [8, 128], strides = [1, 1]} : vector<8x384xf32> to vector<8x128xf32>
      %52 = arith.addf %50, %51 : vector<8x128xf32>
      %53 = arith.negf %52 : vector<8x128xf32>
      %54 = math.exp %53 : vector<8x128xf32>
      %cst_22 = arith.constant 1.000000e+00 : f32
      %55 = vector.broadcast %cst_22 : f32 to vector<8x128xf32>
      %56 = arith.addf %55, %54 : vector<8x128xf32>
      %57 = arith.divf %55, %56 : vector<8x128xf32>
      %58 = vector.extract_strided_slice %17 {offsets = [0, 128], sizes = [8, 128], strides = [1, 1]} : vector<8x384xf32> to vector<8x128xf32>
      %59 = vector.extract_strided_slice %23 {offsets = [0, 128], sizes = [8, 128], strides = [1, 1]} : vector<8x384xf32> to vector<8x128xf32>
      %60 = arith.addf %58, %59 : vector<8x128xf32>
      %61 = arith.negf %60 : vector<8x128xf32>
      %62 = math.exp %61 : vector<8x128xf32>
      %cst_23 = arith.constant 1.000000e+00 : f32
      %63 = vector.broadcast %cst_23 : f32 to vector<8x128xf32>
      %64 = arith.addf %63, %62 : vector<8x128xf32>
      %65 = arith.divf %63, %64 : vector<8x128xf32>
      %66 = vector.extract_strided_slice %17 {offsets = [0, 256], sizes = [8, 128], strides = [1, 1]} : vector<8x384xf32> to vector<8x128xf32>
      %67 = vector.extract_strided_slice %23 {offsets = [0, 256], sizes = [8, 128], strides = [1, 1]} : vector<8x384xf32> to vector<8x128xf32>
      %68 = arith.mulf %57, %67 : vector<8x128xf32>
      %69 = arith.addf %66, %68 : vector<8x128xf32>
      %70 = math.tanh %69 : vector<8x128xf32>
      %cst_24 = arith.constant 1.000000e+00 : f32
      %71 = vector.broadcast %cst_24 : f32 to vector<8x128xf32>
      %72 = arith.subf %71, %65 : vector<8x128xf32>
      %73 = arith.mulf %72, %70 : vector<8x128xf32>
      %74 = arith.mulf %65, %arg11 : vector<8x128xf32>
      %75 = arith.addf %73, %74 : vector<8x128xf32>
      %76 = vector.broadcast %arg9 : i32 to vector<8x128xi32>
      %77 = arith.cmpi slt, %76, %1 : vector<8x128xi32>
      %78 = arith.select %77, %49, %arg10 : vector<8x128xi1>, vector<8x128xf32>
      %79 = vector.broadcast %11 : i32 to vector<8x128xi32>
      %80 = arith.cmpi slt, %79, %1 : vector<8x128xi32>
      %81 = arith.select %80, %75, %arg11 : vector<8x128xi1>, vector<8x128xf32>
      scf.yield %78, %81 : vector<8x128xf32>, vector<8x128xf32>
    }
    %8 = arith.addf %7#0, %7#1 : vector<8x128xf32>
    %c0_6 = arith.constant 0 : index
    %c0_7 = arith.constant 0 : index
    %9 = vector.load %arg8[%c0_6, %c0_7] : memref<8x128xf32, #tpu.memory_space<vmem>>, vector<8x128xf32>
    tpu.vector_store %arg8[%c0_6, %c0_7], %8 {strides = array<i32>} : memref<8x128xf32, #tpu.memory_space<vmem>>, vector<8x128xf32>,
    return
  }
}

</mosaic_0001>

<bundles_post_ra>
// kernel: tpu_custom_call.1
= control target key start
LH: loop header
LB: loop body
LE: loop exit
PB: predicated region body
PF: predicated region fallthrough
CT: control target
= control target key end

     0   :  { %14 = vsyncpa [#allocation4], 0  ;;  %s1369_s0 = inlined_call_operand.<no memory space> [shape: s32[1], index: 0, kind: input, shape index: {}]   ;;  %s1370_s1 = inlined_call_operand.hbm [shape: s32[8,128], index: 1, kind: input, shape index: {}]   ;;  %s1371_s2 = inlined_call_operand.hbm [shape: f32[8,8,384], index: 2, kind: input, shape index: {}]   ;;  %s1372_s3 = inlined_call_operand.hbm [shape: f32[8,8,384], index: 3, kind: input, shape index: {}]   ;;  %s1373_s4 = inlined_call_operand.hbm [shape: f32[128,384], index: 4, kind: input, shape index: {}]   ;;  %s1374_s5 = inlined_call_operand.hbm [shape: f32[128,384], index: 5, kind: input, shape index: {}]   ;;  %s1375_s6 = inlined_call_operand.hbm [shape: f32[8,384], index: 6, kind: input, shape index: {}]   ;;  %s1376_s7 = inlined_call_operand.vmem [shape: f32[8,384], index: 7, kind: input, shape index: {}]   ;;  %s1377_s8 = inlined_call_operand.hbm [shape: f32[8,128], index: 8, kind: output, shape index: {}]  }
   0x1   :  { %15 = vsyncpa [#allocation7], 0 }
   0x2   :  { %16 = vsyncpa [#allocation10], 0 }
   0x3   :  { %17 = vsyncpa [#allocation13], 0 }
   0x4   :  { %18 = vsyncpa [#allocation5], 0  ;;  %s1102_s27 = smov [#allocation6]   ;;  %s898_s9 = scalar_lea.hbm %s1371_s2, 3072 }
   0x5   :  { %s36_s28 = sshll.u32 %s1102_s27, 4  ;;  %p899_p0 = scmp.ne.s32.totalorder %s1371_s2, %s898_s9  ;;  %s37_s28 = int_to_ptr.vmem [resolvable:$true] %s36_s28 }
   0x6   :  { %p902_p1 = scmp.lt.u32.totalorder %s898_s9, %s1371_s2 }
   0x8   :  { %p904_p2 = pnand %p902_p1, %p899_p0 }
   0xa   :  { %907 = shalt.err (!%p904_p2)
}
   0xb   :  { %s908_s14 = scalar_lea.vmem %s37_s28, 3072  ;;  %p913_p4 = scmp.lt.s32.totalorder %s37_s28, %s37_s28 }
   0xc   :  { %p909_p3 = scmp.ne.s32.totalorder %s37_s28, %s908_s14  ;;  %p914_p5 = scmp.lt.s32.totalorder %s908_s14, %s908_s14 }
   0xe   :  { %p915_p6 = por %p914_p5, %p913_p4 }
  0x10   :  { %p916_p7 = pnand %p915_p6, %p909_p3 }
  0x12   :  { %919 = shalt.err (!%p916_p7)
}
  0x13   :  { %s1103_s15 = smov 384   ;;  %s1104_s16 = smov 24  }
  0x14   :  { %42 = dma.hbm_to_vmem [thread:$0]  %s1371_s2, 3072, %s37_s28, [#allocation7], %s1103_s15, %s1103_s15, %s1104_s16  }
  0x15   :  { %s1105_s19 = smov [#allocation9]   ;;  %s1106_s21 = smov [#allocation3]  }
  0x16   :  { %s60_s20 = sshll.u32 %s1105_s19, 4  ;;  %s27_s22 = sshll.u32 %s1106_s21, 4  ;;  %s61_s20 = int_to_ptr.vmem [resolvable:$true] %s60_s20  ;;  %s28_s22 = int_to_ptr.vmem [resolvable:$true] %s27_s22 }
  0x17   :  { %s920_s25 = scalar_lea.hbm %s1373_s4, 6144 }
  0x18   :  { %p921_p8 = scmp.ne.s32.totalorder %s1373_s4, %s920_s25  ;;  %p924_p9 = scmp.lt.u32.totalorder %s920_s25, %s1373_s4 }
  0x1a   :  { %p926_p10 = pnand %p924_p9, %p921_p8 }
  0x1c   :  { %929 = shalt.err (!%p926_p10)
}
  0x1d   :  { %s930_s2 = scalar_lea.vmem %s61_s20, 6144  ;;  %p935_p12 = scmp.lt.s32.totalorder %s61_s20, %s61_s20 }
  0x1e   :  { %p931_p11 = scmp.ne.s32.totalorder %s61_s20, %s930_s2  ;;  %p936_p13 = scmp.lt.s32.totalorder %s930_s2, %s930_s2 }
  0x20   :  { %p937_p0 = por %p936_p13, %p935_p12 }
  0x22   :  { %p938_p1 = pnand %p937_p0, %p931_p11 }
  0x24   :  { %941 = shalt.err (!%p938_p1)
}
  0x25   :  { %66 = dma.hbm_to_vmem [thread:$0]  %s1373_s4, 6144, %s61_s20, [#allocation10], %s1103_s15, %s1103_s15, %s1104_s16  }
  0x26   :  { %s942_s12 = scalar_lea.hbm %s1370_s1, 128 }
  0x27   :  { %p943_p2 = scmp.ne.s32.totalorder %s1370_s1, %s942_s12  ;;  %p946_p3 = scmp.lt.u32.totalorder %s942_s12, %s1370_s1 }
  0x29   :  { %p948_p4 = pnand %p946_p3, %p943_p2 }
  0x2b   :  { %951 = shalt.err (!%p948_p4)
}
  0x2c   :  { %s952_s19 = scalar_lea.vmem %s28_s22, 128  ;;  %p957_p6 = scmp.lt.s32.totalorder %s28_s22, %s28_s22 }
  0x2d   :  { %p953_p5 = scmp.ne.s32.totalorder %s28_s22, %s952_s19  ;;  %p958_p7 = scmp.lt.s32.totalorder %s952_s19, %s952_s19 }
  0x2f   :  { %p959_p8 = por %p958_p7, %p957_p6 }
  0x31   :  { %p960_p9 = pnand %p959_p8, %p953_p5 }
  0x33   :  { %963 = shalt.err (!%p960_p9)
}
  0x34   :  { %30 = dma.hbm_to_vmem [thread:$0]  %s1370_s1, 128, %s28_s22, [#allocation4]  }
  0x35   :  { %s1107_s21 = smov [#allocation8]   ;;  %s1108_s24 = smov [#allocation11]  }
  0x36   :  { %s48_s23 = sshll.u32 %s1107_s21, 4  ;;  %s72_s25 = sshll.u32 %s1108_s24, 4  ;;  %s49_s23 = int_to_ptr.vmem [resolvable:$true] %s48_s23  ;;  %s73_s25 = int_to_ptr.vmem [resolvable:$true] %s72_s25 }
  0x37   :  { %s964_s29 = scalar_lea.hbm %s1372_s3, 3072 }
  0x38   :  { %p965_p10 = scmp.ne.s32.totalorder %s1372_s3, %s964_s29  ;;  %p968_p11 = scmp.lt.u32.totalorder %s964_s29, %s1372_s3 }
  0x3a   :  { %p970_p12 = pnand %p968_p11, %p965_p10 }
  0x3c   :  { %973 = shalt.err (!%p970_p12)
}
  0x3d   :  { %s974_s1 = scalar_lea.vmem %s49_s23, 3072  ;;  %p979_p0 = scmp.lt.s32.totalorder %s49_s23, %s49_s23 }
  0x3e   :  { %p975_p13 = scmp.ne.s32.totalorder %s49_s23, %s974_s1  ;;  %p980_p1 = scmp.lt.s32.totalorder %s974_s1, %s974_s1 }
  0x40   :  { %p981_p2 = por %p980_p1, %p979_p0 }
  0x42   :  { %p982_p3 = pnand %p981_p2, %p975_p13 }
  0x44   :  { %985 = shalt.err (!%p982_p3)
}
  0x45   :  { %54 = dma.hbm_to_vmem [thread:$0]  %s1372_s3, 3072, %s49_s23, [#allocation7], %s1103_s15, %s1103_s15, %s1104_s16  }
  0x46   :  { %s986_s13 = scalar_lea.hbm %s1374_s5, 6144 }
  0x47   :  { %p987_p4 = scmp.ne.s32.totalorder %s1374_s5, %s986_s13  ;;  %p990_p5 = scmp.lt.u32.totalorder %s986_s13, %s1374_s5 }
  0x49   :  { %p992_p6 = pnand %p990_p5, %p987_p4 }
  0x4b   :  { %995 = shalt.err (!%p992_p6)
}
  0x4c   :  { %s996_s4 = scalar_lea.vmem %s73_s25, 6144  ;;  %p1001_p8 = scmp.lt.s32.totalorder %s73_s25, %s73_s25 }
  0x4d   :  { %p997_p7 = scmp.ne.s32.totalorder %s73_s25, %s996_s4  ;;  %p1002_p9 = scmp.lt.s32.totalorder %s996_s4, %s996_s4 }
  0x4f   :  { %p1003_p10 = por %p1002_p9, %p1001_p8 }
  0x51   :  { %p1004_p11 = pnand %p1003_p10, %p997_p7 }
  0x53   :  { %1007 = shalt.err (!%p1004_p11)
}
  0x54   :  { %78 = dma.hbm_to_vmem [thread:$0]  %s1374_s5, 6144, %s73_s25, [#allocation10], %s1103_s15, %s1103_s15, %s1104_s16  }
  0x55   :  { %s1109_s21 = smov [#allocation12]   ;;  %s1008_s27 = scalar_lea.hbm %s1375_s6, 384 }
  0x56   :  { %s85_s23 = sshll.u32 %s1109_s21, 4  ;;  %p1009_p12 = scmp.ne.s32.totalorder %s1375_s6, %s1008_s27  ;;  %s86_s23 = int_to_ptr.vmem [resolvable:$true] %s85_s23 }
  0x57   :  { %p1012_p13 = scmp.lt.u32.totalorder %s1008_s27, %s1375_s6 }
  0x59   :  { %p1014_p0 = pnand %p1012_p13, %p1009_p12 }
  0x5b   :  { %1017 = shalt.err (!%p1014_p0)
}
  0x5c   :  { %s1018_s9 = scalar_lea.vmem %s86_s23, 384  ;;  %p1023_p2 = scmp.lt.s32.totalorder %s86_s23, %s86_s23 }
  0x5d   :  { %p1019_p1 = scmp.ne.s32.totalorder %s86_s23, %s1018_s9  ;;  %p1024_p3 = scmp.lt.s32.totalorder %s1018_s9, %s1018_s9 }
  0x5f   :  { %p1025_p4 = por %p1024_p3, %p1023_p2 }
  0x61   :  { %p1026_p5 = pnand %p1025_p4, %p1019_p1 }
  0x63   :  { %1029 = shalt.err (!%p1026_p5)
}
  0x64   :  { %88 = dma.hbm_to_vmem [thread:$0]  %s1375_s6, 384, %s86_s23, [#allocation13]  }
  0x65   :  { %1072 = dma.done.wait [#allocation4], 128  }
  0x66   :  { %1073 = vsyncadd [#allocation4], 4294967168 }
  0x67   :  { %1074 = dma.done.wait [#allocation7], 6144  }
  0x68   :  { %1075 = vsyncadd [#allocation7], 4294961152 }
  0x69   :  { %1076 = dma.done.wait [#allocation10], 12288  }
  0x6a   :  { %1077 = vsyncadd [#allocation10], 4294955008 }
  0x6b   :  { %1078 = dma.done.wait [#allocation13], 384  }
  0x6c   :  { %1079 = vsyncadd [#allocation13], 4294966912  ;;  %v1243_v0 = vld [vmem:[#allocation3] sm:$0xff]  ;;  %v1245_v1 = vld [vmem:[#allocation12] sm:$0xff]  ;;  %p600_p6 = scmp.le.s32.totalorder %s1369_s0, 0  ;;  %v1269_v7 = vmov 0.0  }
  0x6d   :  { %v1247_v2 = vld [vmem:[#allocation12 + $0x8] sm:$0xff]  ;;  %v1249_v3 = vld [vmem:[#allocation12 + $0x10] sm:$0xff]  ;;  %v1254_v4 = vld [vmem:[%s1376_s7] sm:$0xff]  ;;  %v1271_v8 = vmov 0.0   ;;  %v1273_v9 = vmov (!%p600_p6), 0.0   ;;  %v1275_v10 = vmov (!%p600_p6), 0.0  }
  0x6e   :  { %v1259_v5 = vld [vmem:[%s1376_s7 + $0x8] sm:$0xff]  ;;  %v1264_v6 = vld [vmem:[%s1376_s7 + $0x10] sm:$0xff]  ;;  %593 = sbr.rel (%p600_p6) target bundleno = 447 (0x1bf), region = 79  ;;  %s1277_s13 = smov (!%p600_p6), 0  }
  0x75 LB: > { %v140_v11 = vld [vmem:[#allocation9 + $0x8] sm:$0xff]  ;;  %v143_v12 = vld [vmem:[#allocation9 + $0x20] sm:$0xff]  ;;  %v142_v15 = vld [vmem:[#allocation9 + $0x18] sm:$0xff]  ;;  %v1110_v18 = vmov 0.0|0.0   ;;  %v1111_v19 = vmov 0.0   ;;  %vm1112_vm0 = vmmov 0   ;;  %s1092_s13 = sphi %s1277_s13, %s120_s13   ;;  %v1088_v10 = vphi %v1275_v10, %v1379_v10   ;;  %v1084_v9 = vphi %v1273_v9, %v1378_v9  }
  0x76   : > { %v139_v13 = vld [vmem:[#allocation9] sm:$0xff]  ;;  %v714_v14 = vpack.c.bf16 %v143_v12, %v140_v11  ;;  %v146_v16 = vld [vmem:[#allocation9 + $0x38] sm:$0xff]  ;;  %v149_v17 = vld [vmem:[#allocation9 + $0x50] sm:$0xff]  ;;  %746 = vmatprep.subr.bf16.mxu1 %v1110_v18  ;;  %251 = vmatprep.mubr.f32.mxu0 %v1111_v19  ;;  %s608_s7 = smul.u32 24, %s1092_s13  ;;  %s601_s19 = sadd.s32 4294967295, %s1369_s0 }
  0x77   : > { %v716_v20 = vpack.c.bf16 %v142_v15, %v139_v13  ;;  %v718_v21 = vpack.c.bf16 %v149_v17, %v146_v16  ;;  %v145_v22 = vld [vmem:[#allocation9 + $0x30] sm:$0xff]  ;;  %v148_v23 = vld [vmem:[#allocation9 + $0x48] sm:$0xff]  ;;  %676 = vmatprep.mubr.msk.f32.mxu1 %vm1112_vm0, %v1111_v19  ;;  %v155_v25 = vld [vmem:[#allocation9 + $0x80] sm:$0xff]  ;;  %s1321_s4 = ssub.s32 %s601_s19, %s1092_s13 }
  0x78   : > { %v152_v24 = vld [vmem:[#allocation9 + $0x68] sm:$0xff]  ;;  %715 = vmatprep.subr.bf16.mxu0 %v714_v14  ;;  %v720_v26 = vpack.c.bf16 %v148_v23, %v145_v22  ;;  %v151_v28 = vld [vmem:[#allocation9 + $0x60] sm:$0xff]  ;;  %v154_v29 = vld [vmem:[#allocation9 + $0x78] sm:$0xff]  ;;  %s129_s14 = scalar_lea.vmem [#allocation6], %s608_s7  ;;  %s609_s3 = smul.u32 24, %s1321_s4 }
  0x79   : > { %717 = vmatpush1.bf16.msra.mxu0 %v716_v20  ;;  %v722_v27 = vpack.c.bf16 %v155_v25, %v152_v24  ;;  %v158_v30 = vld [vmem:[#allocation9 + $0x98] sm:$0xff]  ;;  %v161_v31 = vld [vmem:[#allocation9 + $0xb0] sm:$0xff]  ;;  %v724_v32 = vpack.c.bf16 %v154_v29, %v151_v28  ;;  %v160_v35 = vld [vmem:[#allocation9 + $0xa8] sm:$0xff] }
  0x7a   : > { %719 = vmatprep.subr.bf16.mxu0 %v718_v21  ;;  %v726_v33 = vpack.c.bf16 %v161_v31, %v158_v30  ;;  %v157_v34 = vld [vmem:[#allocation9 + $0x90] sm:$0xff]  ;;  %v164_v36 = vld [vmem:[#allocation9 + $0xc8] sm:$0xff]  ;;  %v167_v37 = vld [vmem:[#allocation9 + $0xe0] sm:$0xff]  ;;  %s1325_s20 = scalar_lea.vmem [#allocation8], %s609_s3 }
  0x7b   : > { %v141_v38 = vld [vmem:[#allocation9 + $0x10] sm:$0xff]  ;;  %v144_v39 = vld [vmem:[#allocation9 + $0x28] sm:$0xff]  ;;  %v147_v41 = vld [vmem:[#allocation9 + $0x40] sm:$0xff]  ;;  %v728_v43 = vpack.c.bf16 %v160_v35, %v157_v34  ;;  %v730_v44 = vpack.c.bf16 %v167_v37, %v164_v36 }
  0x7c   : > { %v747_v40 = vpack.c.bf16 %v144_v39, %v141_v38  ;;  %v150_v42 = vld [vmem:[#allocation9 + $0x58] sm:$0xff]  ;;  %v163_v45 = vld [vmem:[#allocation9 + $0xc0] sm:$0xff]  ;;  %v173_v49 = vld [vmem:[#allocation9 + $0x110] sm:$0xff] }
  0x7d   : > { %721 = vmatpush1.bf16.msra.mxu0 %v720_v26  ;;  %v166_v46 = vld [vmem:[#allocation9 + $0xd8] sm:$0xff]  ;;  %v750_v48 = vpack.c.bf16 %v150_v42, %v147_v41  ;;  %v153_v50 = vld [vmem:[#allocation9 + $0x70] sm:$0xff]  ;;  %v156_v51 = vld [vmem:[#allocation9 + $0x88] sm:$0xff] }
  0x7e   : > { %723 = vmatprep.subr.bf16.mxu0 %v722_v27  ;;  %v170_v47 = vld [vmem:[#allocation9 + $0xf8] sm:$0xff]  ;;  %748 = vmatpush3.bf16.msra.mxu1 %v747_v40  ;;  %v732_v52 = vpack.c.bf16 %v166_v46, %v163_v45  ;;  %v169_v54 = vld [vmem:[#allocation9 + $0xf0] sm:$0xff]  ;;  %v172_v55 = vld [vmem:[#allocation9 + $0x108] sm:$0xff]  ;;  %v753_v57 = vpack.c.bf16 %v156_v51, %v153_v50 }
  0x7f   : > { %749 = vmatprep.subr.bf16.mxu1 %v1110_v18  ;;  %v734_v53 = vpack.c.bf16 %v173_v49, %v170_v47  ;;  %v176_v56 = vld [vmem:[#allocation9 + $0x128] sm:$0xff]  ;;  %v179_v58 = vld [vmem:[#allocation9 + $0x140] sm:$0xff]  ;;  %v162_v60 = vld [vmem:[#allocation9 + $0xb8] sm:$0xff]  ;;  %v736_v61 = vpack.c.bf16 %v172_v55, %v169_v54 }
  0x80   : > { %v159_v59 = vld [vmem:[#allocation9 + $0xa0] sm:$0xff]  ;;  %v738_v62 = vpack.c.bf16 %v179_v58, %v176_v56  ;;  %v178_v7 = vld [vmem:[#allocation9 + $0x138] sm:$0xff]  ;;  %v185_v12 = vld [vmem:[#allocation9 + $0x170] sm:$0xff] }
  0x81   : > { %725 = vmatpush1.bf16.msra.mxu0 %v724_v32  ;;  %v175_v63 = vld [vmem:[#allocation9 + $0x120] sm:$0xff]  ;;  %v182_v8 = vld [vmem:[#allocation9 + $0x158] sm:$0xff]  ;;  %v756_v11 = vpack.c.bf16 %v162_v60, %v159_v59  ;;  %v165_v13 = vld [vmem:[#allocation9 + $0xd0] sm:$0xff] }
  0x82   : > { %727 = vmatprep.subr.bf16.mxu0 %v726_v33  ;;  %751 = vmatpush3.bf16.msra.mxu1 %v750_v48  ;;  %v168_v14 = vld [vmem:[#allocation9 + $0xe8] sm:$0xff]  ;;  %v740_v15 = vpack.c.bf16 %v178_v7, %v175_v63  ;;  %v742_v16 = vpack.c.bf16 %v185_v12, %v182_v8  ;;  %v181_v17 = vld [vmem:[#allocation9 + $0x150] sm:$0xff]  ;;  %v332_v23 = vld [vmem:[#allocation11 + $0x20] sm:$0xff] }
  0x83   : > { %752 = vmatprep.subr.bf16.mxu1 %v1110_v18  ;;  %v184_v20 = vld [vmem:[#allocation9 + $0x168] sm:$0xff]  ;;  %v759_v22 = vpack.c.bf16 %v168_v14, %v165_v13  ;;  %v171_v24 = vld [vmem:[#allocation9 + $0x100] sm:$0xff]  ;;  %v174_v25 = vld [vmem:[#allocation9 + $0x118] sm:$0xff] }
  0x84   : > { %v329_v21 = vld [vmem:[#allocation11 + $0x8] sm:$0xff]  ;;  %v744_v26 = vpack.c.bf16 %v184_v20, %v181_v17  ;;  %v328_v28 = vld [vmem:[#allocation11] sm:$0xff]  ;;  %v331_v29 = vld [vmem:[#allocation11 + $0x18] sm:$0xff]  ;;  %v762_v31 = vpack.c.bf16 %v174_v25, %v171_v24 }
  0x85   : > { %729 = vmatpush1.bf16.msra.mxu0 %v728_v43  ;;  %v770_v27 = vpack.c.bf16 %v332_v23, %v329_v21  ;;  %v335_v30 = vld [vmem:[#allocation11 + $0x38] sm:$0xff]  ;;  %v338_v32 = vld [vmem:[#allocation11 + $0x50] sm:$0xff]  ;;  %v180_v34 = vld [vmem:[#allocation9 + $0x148] sm:$0xff]  ;;  %v772_v35 = vpack.c.bf16 %v331_v29, %v328_v28 }
  0x86   : > { %731 = vmatprep.subr.bf16.mxu0 %v730_v44  ;;  %754 = vmatpush3.bf16.msra.mxu1 %v753_v57  ;;  %v177_v33 = vld [vmem:[#allocation9 + $0x130] sm:$0xff]  ;;  %v774_v36 = vpack.c.bf16 %v338_v32, %v335_v30  ;;  %v337_v38 = vld [vmem:[#allocation11 + $0x48] sm:$0xff]  ;;  %v344_v41 = vld [vmem:[#allocation11 + $0x80] sm:$0xff] }
  0x87   : > { %755 = vmatprep.subr.bf16.mxu1 %v1110_v18  ;;  %v334_v37 = vld [vmem:[#allocation11 + $0x30] sm:$0xff]  ;;  %v341_v39 = vld [vmem:[#allocation11 + $0x68] sm:$0xff]  ;;  %v765_v40 = vpack.c.bf16 %v180_v34, %v177_v33  ;;  %v183_v42 = vld [vmem:[#allocation9 + $0x160] sm:$0xff] }
  0x88   : > { %v186_v43 = vld [vmem:[#allocation9 + $0x178] sm:$0xff]  ;;  %v776_v44 = vpack.c.bf16 %v337_v38, %v334_v37  ;;  %v778_v45 = vpack.c.bf16 %v344_v41, %v341_v39  ;;  %v340_v46 = vld [vmem:[#allocation11 + $0x60] sm:$0xff]  ;;  %v350_v50 = vld [vmem:[#allocation11 + $0xb0] sm:$0xff] }
  0x89   : > { %733 = vmatpush1.bf16.msra.mxu0 %v732_v52  ;;  %v343_v47 = vld [vmem:[#allocation11 + $0x78] sm:$0xff]  ;;  %v768_v49 = vpack.c.bf16 %v186_v43, %v183_v42  ;;  %v330_v51 = vld [vmem:[#allocation11 + $0x10] sm:$0xff]  ;;  %v333_v52 = vld [vmem:[#allocation11 + $0x28] sm:$0xff] }
  0x8a   : > { %735 = vmatprep.subr.bf16.mxu0 %v734_v53  ;;  %757 = vmatpush3.bf16.msra.mxu1 %v756_v11  ;;  %v347_v48 = vld [vmem:[#allocation11 + $0x98] sm:$0xff]  ;;  %v780_v53 = vpack.c.bf16 %v343_v47, %v340_v46  ;;  %v346_v55 = vld [vmem:[#allocation11 + $0x90] sm:$0xff]  ;;  %v349_v56 = vld [vmem:[#allocation11 + $0xa8] sm:$0xff]  ;;  %v803_v58 = vpack.c.bf16 %v333_v52, %v330_v51 }
  0x8b   : > { %758 = vmatprep.subr.bf16.mxu1 %v1110_v18  ;;  %v782_v54 = vpack.c.bf16 %v350_v50, %v347_v48  ;;  %v353_v57 = vld [vmem:[#allocation11 + $0xc8] sm:$0xff]  ;;  %v356_v59 = vld [vmem:[#allocation11 + $0xe0] sm:$0xff]  ;;  %v355_v8 = vld [vmem:[#allocation11 + $0xd8] sm:$0xff] }
  0x8c   : > { %v336_v60 = vld [vmem:[#allocation11 + $0x40] sm:$0xff]  ;;  %v786_v63 = vpack.c.bf16 %v356_v59, %v353_v57  ;;  %v359_v11 = vld [vmem:[#allocation11 + $0xf8] sm:$0xff]  ;;  %v362_v13 = vld [vmem:[#allocation11 + $0x110] sm:$0xff] }
  0x8d   : > { %737 = vmatpush1.bf16.msra.mxu0 %v736_v61  ;;  %v339_v61 = vld [vmem:[#allocation11 + $0x58] sm:$0xff]  ;;  %v352_v7 = vld [vmem:[#allocation11 + $0xc0] sm:$0xff]  ;;  %v342_v14 = vld [vmem:[#allocation11 + $0x70] sm:$0xff]  ;;  %v790_v17 = vpack.c.bf16 %v362_v13, %v359_v11 }
  0x8e   : > { %739 = vmatprep.subr.bf16.mxu0 %v738_v62  ;;  %760 = vmatpush3.bf16.msra.mxu1 %v759_v22  ;;  %v784_v62 = vpack.c.bf16 %v349_v56, %v346_v55  ;;  %v806_v12 = vpack.c.bf16 %v339_v61, %v336_v60  ;;  %v358_v20 = vld [vmem:[#allocation11 + $0xf0] sm:$0xff]  ;;  %v361_v21 = vld [vmem:[#allocation11 + $0x108] sm:$0xff]  ;;  %v368_v24 = vld [vmem:[#allocation11 + $0x140] sm:$0xff] }
  0x8f   : > { %761 = vmatprep.subr.bf16.mxu1 %v1110_v18  ;;  %v365_v22 = vld [vmem:[#allocation11 + $0x128] sm:$0xff]  ;;  %v348_v25 = vld [vmem:[#allocation11 + $0xa0] sm:$0xff]  ;;  %v371_v30 = vld [vmem:[#allocation11 + $0x158] sm:$0xff] }
  0x90   : > { %v794_v28 = vpack.c.bf16 %v368_v24, %v365_v22  ;;  %v364_v29 = vld [vmem:[#allocation11 + $0x120] sm:$0xff]  ;;  %v374_v32 = vld [vmem:[#allocation11 + $0x170] sm:$0xff]  ;;  %v357_v34 = vld [vmem:[#allocation11 + $0xe8] sm:$0xff] }
  0x91   : > { %741 = vmatpush1.bf16.msra.mxu0 %v740_v15  ;;  %v345_v15 = vld [vmem:[#allocation11 + $0x88] sm:$0xff]  ;;  %v354_v33 = vld [vmem:[#allocation11 + $0xd0] sm:$0xff]  ;;  %v363_v41 = vld [vmem:[#allocation11 + $0x118] sm:$0xff] }
  0x92   : > { %743 = vmatprep.subr.bf16.mxu0 %v742_v16  ;;  %763 = vmatpush3.bf16.msra.mxu1 %v762_v31  ;;  %v788_v16 = vpack.c.bf16 %v355_v8, %v352_v7  ;;  %v809_v23 = vpack.c.bf16 %v345_v15, %v342_v14  ;;  %v370_v37 = vld [vmem:[#allocation11 + $0x150] sm:$0xff]  ;;  %v373_v38 = vld [vmem:[#allocation11 + $0x168] sm:$0xff]  ;;  %v815_v39 = vpack.c.bf16 %v357_v34, %v354_v33  ;;  %v372_v47 = vld [vmem:[#allocation11 + $0x160] sm:$0xff] }
  0x93   : > { %764 = vmatprep.subr.bf16.mxu1 %v1110_v18  ;;  %v800_v42 = vpack.c.bf16 %v373_v38, %v370_v37  ;;  %v375_v48 = vld [vmem:[#allocation11 + $0x178] sm:$0xff]  ;;  %v131_v56 = vld [vmem:[%s129_s14 + $0x8] sm:$0xff] }
  0x94   : > { %v130_v50 = vld [vmem:[%s129_s14] sm:$0xff] }
  0x95   : > { %745 = vmatpush1.bf16.msra.mxu0 %v744_v26  ;;  %v351_v26 = vld [vmem:[#allocation11 + $0xb8] sm:$0xff] }
  0x96   : > { %771 = vmatprep.subr.bf16.mxu0 %v770_v27  ;;  %766 = vmatpush3.bf16.msra.mxu1 %v765_v40  ;;  %v792_v27 = vpack.c.bf16 %v361_v21, %v358_v20  ;;  %v812_v31 = vpack.c.bf16 %v351_v26, %v348_v25  ;;  %v360_v40 = vld [vmem:[#allocation11 + $0x100] sm:$0xff]  ;;  %v136_v14 = vld [vmem:[%s1325_s20] sm:$0xff] }
  0x97   : > { %767 = vmatprep.subr.bf16.mxu1 %v1110_v18  ;;  %v818_v43 = vpack.c.bf16 %v363_v41, %v360_v40 }
  0x98   : > { %252 = vmatmul.mubr.f32.vlgmr.msra.gmra.mrb[0].mxu0 %v1088_v10 }
  0x99   : > { %773 = vmatpush1.bf16.msra.mxu0 %v772_v35  ;;  %440 = vmatprep.mubr.f32.mxu0 %v1111_v19 }
  0x9a   : > { %775 = vmatprep.subr.bf16.mxu0 %v774_v36  ;;  %769 = vmatpush3.bf16.msra.mxu1 %v768_v49  ;;  %v798_v36 = vpack.c.bf16 %v374_v32, %v371_v30  ;;  %v824_v49 = vpack.c.bf16 %v375_v48, %v372_v47 }
  0x9b   : > { %802 = vmatprep.subr.bf16.mxu1 %v1110_v18 }
  0x9d   : > { %777 = vmatpush1.bf16.msra.mxu0 %v776_v44  ;;  %677 = vmatmul.mubr.f32.vlgmr.msra.gmra.mrb[0].mxu1 %v1088_v10  ;;  %v366_v44 = vld [vmem:[#allocation11 + $0x130] sm:$0xff] }
  0x9e   : > { %779 = vmatprep.subr.bf16.mxu0 %v778_v45  ;;  %804 = vmatpush3.bf16.msra.mxu1 %v803_v58  ;;  %v369_v45 = vld [vmem:[#allocation11 + $0x148] sm:$0xff] }
  0x9f   : > { %805 = vmatprep.subr.bf16.mxu1 %v1110_v18  ;;  %711 = vmatprep.mubr.msk.f32.mxu1 %vm1112_vm0, %v1111_v19  ;;  %v367_v19 = vld [vmem:[#allocation11 + $0x138] sm:$0xff]  ;;  %v821_v46 = vpack.c.bf16 %v369_v45, %v366_v44 }
  0xa0   : > { %v796_v35 = vpack.c.bf16 %v367_v19, %v364_v29  ;;  %v559_v19 = vstv %s1092_s13  ;;  %s120_s13 = sadd.s32 1, %s1092_s13  }
  0xa1   : > { %781 = vmatpush1.bf16.msra.mxu0 %v780_v53  ;;  %vm560_vm1 = vcmp.lt.s32.totalorder %v559_v19, %v1243_v0  ;;  %p119_p7 = scmp.ge.s32.totalorder %s120_s13, %s1369_s0 }
  0xa2   : > { %783 = vmatprep.subr.bf16.mxu0 %v782_v54  ;;  %807 = vmatpush3.bf16.msra.mxu1 %v806_v12  ;;  %v132_v12 = vld [vmem:[%s129_s14 + $0x10] sm:$0xff] }
  0xa3   : > { %808 = vmatprep.subr.bf16.mxu1 %v1110_v18 }
  0xa5   : > { %785 = vmatpush1.bf16.msra.mxu0 %v784_v62 }
  0xa6   : > { %787 = vmatprep.subr.bf16.mxu0 %v786_v63  ;;  %810 = vmatpush3.bf16.msra.mxu1 %v809_v23  ;;  %v137_v23 = vld [vmem:[%s1325_s20 + $0x8] sm:$0xff] }
  0xa7   : > { %811 = vmatprep.subr.bf16.mxu1 %v1110_v18 }
  0xa9   : > { %789 = vmatpush1.bf16.msra.mxu0 %v788_v16 }
  0xaa   : > { %791 = vmatprep.subr.bf16.mxu0 %v790_v17  ;;  %813 = vmatpush3.bf16.msra.mxu1 %v812_v31 }
  0xab   : > { %814 = vmatprep.subr.bf16.mxu1 %v1110_v18 }
  0xad   : > { %793 = vmatpush1.bf16.msra.mxu0 %v792_v27 }
  0xae   : > { %795 = vmatprep.subr.bf16.mxu0 %v794_v28  ;;  %816 = vmatpush3.bf16.msra.mxu1 %v815_v39 }
  0xaf   : > { %817 = vmatprep.subr.bf16.mxu1 %v1110_v18 }
  0xb1   : > { %797 = vmatpush1.bf16.msra.mxu0 %v796_v35 }
  0xb2   : > { %799 = vmatprep.subr.bf16.mxu0 %v798_v36  ;;  %819 = vmatpush3.bf16.msra.mxu1 %v818_v43 }
  0xb3   : > { %820 = vmatprep.subr.bf16.mxu1 %v1110_v18 }
  0xb5   : > { %801 = vmatpush1.bf16.msra.mxu0 %v800_v42  ;;  %v138_v42 = vld [vmem:[%s1325_s20 + $0x10] sm:$0xff] }
  0xb6   : > { %822 = vmatpush3.bf16.msra.mxu1 %v821_v46  ;;  %v562_v46 = vstv %s1321_s4 }
  0xb7   : > { %823 = vmatprep.subr.bf16.mxu1 %v1110_v18  ;;  %vm563_vm2 = vcmp.lt.s32.totalorder %v562_v46, %v1243_v0 }
  0xb8   : > { %441 = vmatmul.mubr.f32.vlgmr.msra.gmra.mrb[2].mxu0 %v1084_v9 }
  0xba   : > { %825 = vmatpush3.bf16.msra.mxu1 %v824_v49 }
  0xbd   : > { %712 = vmatmul.mubr.f32.vlgmr.msra.gmra.mrb[2].mxu1 %v1084_v9 }
 0x16b   : > { %v253_v51 = vpop.f32.mrb[0].mxu0 }
 0x16c   : > { %v254_v52 = vadd.f32 %v253_v51, %v1245_v1  ;;  %v255_v53 = vpop.f32.mrb[1].mxu0 }
 0x16d   : > { %v256_v54 = vadd.f32 %v255_v53, %v1247_v2 }
 0x16e   : > { %v517_v55 = vadd.f32 %v254_v52, %v130_v50 }
 0x16f   : > { %v524_v58 = vadd.f32 %v256_v54, %v131_v56 }
 0x170   : > { %v604_v57 = vmul.f32 -1.442695, %v517_v55  ;;  %v324_v59 = vpop.f32.mrb[0].mxu1 }
 0x171   : > { %v605_v18 = vmul.f32 -1.442695, %v524_v58  ;;  %v678_v60 = vpop.f32.mrb[1].mxu1  ;;  %v325_v8 = vadd.f32 %v324_v59, %v1249_v3 }
 0x172   : > { %878 = vpow2.f32 %v604_v57 }
 0x173   : > { %880 = vpow2.f32 %v605_v18 }
 0x17c   : > { %v879_v61 = vpop.eup %878 }
 0x17d   : > { %v521_v62 = vadd.f32 1.0, %v879_v61  ;;  %v881_v63 = vpop.eup %880 }
 0x17e   : > { %v528_v7 = vadd.f32 1.0, %v881_v63 }
 0x17f   : > { %882 = vrcp.f32 %v521_v62 }
 0x180   : > { %884 = vrcp.f32 %v528_v7 }
 0x189   : > { %v883_v11 = vpop.eup %882 }
 0x18a   : > { %v531_v13 = vmul.f32 %v883_v11, %v325_v8  ;;  %v885_v26 = vpop.eup %884 }
 0x18b   : > { %v442_v15 = vpop.f32.mrb[2].mxu0  ;;  %v534_v30 = vsub.f32 1.0, %v885_v26  ;;  %v536_v32 = vmul.f32 %v1088_v10, %v885_v26 }
 0x18c   : > { %v532_v16 = vadd.f32 %v531_v13, %v132_v12  ;;  %v443_v17 = vadd.f32 %v442_v15, %v1254_v4  ;;  %v444_v20 = vpop.f32.mrb[3].mxu0 }
 0x18d   : > { %v445_v21 = vadd.f32 %v444_v20, %v1259_v5 }
 0x18e   : > { %886 = vtanh.f32 %v532_v16  ;;  %v538_v22 = vadd.f32 %v443_v17, %v136_v14 }
 0x18f   : > { %v545_v25 = vadd.f32 %v445_v21, %v137_v23 }
 0x190   : > { %v606_v24 = vmul.f32 -1.442695, %v538_v22  ;;  %v513_v27 = vpop.f32.mrb[2].mxu1 }
 0x191   : > { %v607_v28 = vmul.f32 -1.442695, %v545_v25  ;;  %v713_v29 = vpop.f32.mrb[3].mxu1  ;;  %v514_v40 = vadd.f32 %v513_v27, %v1264_v6 }
 0x192   : > { %888 = vpow2.f32 %v606_v24 }
 0x193   : > { %890 = vpow2.f32 %v607_v28 }
 0x198   : > { %v887_v31 = vpop.eup %886 }
 0x199   : > { %v535_v33 = vmul.f32 %v887_v31, %v534_v30 }
 0x19b   : > { %v537_v34 = vadd.f32 %v536_v32, %v535_v33 }
 0x19c   : > { %v889_v35 = vpop.eup %888 }
 0x19d   : > { %v561_v36 = vsel %vm560_vm1, %v537_v34, %v1088_v10   ;;  %v542_v37 = vadd.f32 1.0, %v889_v35  ;;  %v891_v38 = vpop.eup %890 }
 0x19e   : > { %v549_v39 = vadd.f32 1.0, %v891_v38  ;;  %v1381_v8 = vmov (%p119_p7), %v561_v36 }
 0x19f   : > { %892 = vrcp.f32 %v542_v37 }
 0x1a0   : > { %894 = vrcp.f32 %v549_v39 }
 0x1a9   : > { %v893_v41 = vpop.eup %892 }
 0x1aa   : > { %v552_v43 = vmul.f32 %v893_v41, %v514_v40  ;;  %v895_v45 = vpop.eup %894 }
 0x1ab   : > { %v555_v47 = vsub.f32 1.0, %v895_v45  ;;  %v557_v49 = vmul.f32 %v1084_v9, %v895_v45 }
 0x1ac   : > { %v553_v44 = vadd.f32 %v552_v43, %v138_v42 }
 0x1ae   : > { %896 = vtanh.f32 %v553_v44 }
 0x1b8   : > { %v897_v48 = vpop.eup %896  ;;  %122 = sbr.rel (!%p119_p7) target bundleno = 117 (0x75), region = 85 }
 0x1b9   : > { %v556_v50 = vmul.f32 %v897_v48, %v555_v47 }
 0x1bb   : > { %v558_v10 = vadd.f32 %v557_v49, %v556_v50 }
 0x1bd   : > { %v564_v51 = vsel %vm563_vm2, %v558_v10, %v1084_v9   ;;  %v1379_v10 = vmov %v561_v36 }
 0x1be   : > { %v1378_v9 = vmov %v564_v51  ;;  %v1380_v7 = vmov (%p119_p7), %v564_v51 }
 0x1bf PF:  { %v565_v52 = vadd.f32 %v1096_v7, %v1100_v8  ;;  %s1113_s24 = smov [#allocation14]   ;;  %v1100_v8 = vphi %v1271_v8, %v1381_v8   ;;  %v1096_v7 = vphi %v1269_v7, %v1380_v7  }
 0x1c0   :  { %s573_s26 = sshll.u32 %s1113_s24, 4  ;;  %s574_s26 = int_to_ptr.vmem [resolvable:$true] %s573_s26 }
 0x1c1   :  { %566 = vst [vmem:[#allocation14] sm:$0xff] %v565_v52  ;;  %s1030_s27 = scalar_lea.vmem %s574_s26, 128  ;;  %p1035_p9 = scmp.lt.s32.totalorder %s574_s26, %s574_s26 }
 0x1c2   :  { %p1031_p8 = scmp.ne.s32.totalorder %s574_s26, %s1030_s27  ;;  %p1036_p10 = scmp.lt.s32.totalorder %s1030_s27, %s1030_s27 }
 0x1c4   :  { %p1037_p11 = por %p1036_p10, %p1035_p9 }
 0x1c6   :  { %p1038_p12 = pnand %p1037_p11, %p1031_p8 }
 0x1c8   :  { %1041 = shalt.err (!%p1038_p12)
}
 0x1c9   :  { %s1042_s30 = scalar_lea.hbm %s1377_s8, 128 }
 0x1ca   :  { %p1043_p13 = scmp.ne.s32.totalorder %s1377_s8, %s1042_s30  ;;  %p1046_p0 = scmp.lt.u32.totalorder %s1042_s30, %s1377_s8 }
 0x1cc   :  { %p1048_p1 = pnand %p1046_p0, %p1043_p13 }
 0x1ce   :  { %1051 = shalt.err (!%p1048_p1)
}
 0x1cf   :  { %576 = dma.vmem_to_hbm [thread:$0]  %s574_s26, 128, %s1377_s8, [#allocation5]  }
 0x1d0   :  { %1080 = dma.done.wait [#allocation5], 128  }
 0x1d1   :  { %1081 = vsyncadd [#allocation5], 4294967168 }
 0x1d2   :  { %580 = vsyncpa [#allocation4], 1 }
 0x1d3   :  { %581 = vsyncpa [#allocation7], 1 }
 0x1d4   :  { %582 = vsyncpa [#allocation10], 1 }
 0x1d5   :  { %583 = vsyncpa [#allocation13], 1 }
 0x1d6   :  { %584 = vsyncpa [#allocation5], 1 }

</bundles_post_ra>
